<compile_context>
chip_gen: v7x
topology: tpu7x:2x2x1
jax: 0.10.0
libtpu: 0.0.40
codegen_flags: <defaults>
</compile_context>

<pallas_src>
import jax
import jax.numpy as jnp
import numpy as np
from jax.experimental import pallas as pl
from jax.experimental.pallas import tpu as pltpu

N_AUGS = 7  # subsequence, cutout, jitter, scaling, time_warp, window_slice, window_warp
_JITTER_SIGMA = 0.03
_SCALE_SIGMA = 0.1
_MXU_MIN_T = 128  # below this the (T,T) time-mix runs on the VPU (exact f32); MXU otherwise


# ----------------------------- Pallas kernel --------------------------------
def _autoaug_mix_kernel(jc_ref, m_ref, x_ref, alpha_ref, noise_ref, o_ref):
    """out[b] = M @ x[b] + alpha[b] * x[b] + jcoef * noise[b]   (per batch row).

    jc_ref:    SMEM (1,)        jcoef = p[jitter] * sigma_jitter
    m_ref:     VMEM (T, T)      combined time-mixing matrix (same block index every
                                grid step -> resident, fetched once)
    x_ref:     VMEM (BB, T, C)
    alpha_ref: VMEM (BB, 1, C)  p[scaling] * per-(batch, channel) scale
    noise_ref: VMEM (BB, T, C)
    o_ref:     VMEM (BB, T, C)
    """
    # Hoist everything constant across the in-block batch loop (JAX does not CSE
    # broadcasts; do the SMEM read / M load once).
    m = m_ref[...].astype(jnp.float32)          # (T, T)
    jc = jc_ref[0]                              # scalar from SMEM
    bb, t_len, _ = x_ref.shape

    def body(b, carry):
        x = x_ref[b].astype(jnp.float32)        # (T, C)
        if t_len >= _MXU_MIN_T:
            # Large T: route the time mixing through the MXU.
            mixed = jnp.dot(m, x, preferred_element_type=jnp.float32)
        else:
            # Small T (demo sizes): exact-f32 VPU broadcast-multiply-reduce;
            # the MXU is not worth it below ~128.
            mixed = jnp.sum(m[:, :, None] * x[None, :, :], axis=1)
        scaled = alpha_ref[b].astype(jnp.float32) * x            # scaling aug
        jit = jc * noise_ref[b].astype(jnp.float32)              # jitter noise
        o_ref[b] = (mixed + scaled + jit).astype(o_ref.dtype)    # single store per row
        return carry

    jax.lax.fori_loop(0, bb, body, 0, unroll=bb <= 8)


def _pick_block_b(b_total, t_len, c_len, itemsize, vmem_budget_bytes=24 << 20):
    # Per batch row resident in VMEM: x + noise blocks (each double-buffered) and
    # the output block (double-buffered) ~= 6 tiles of (T, C).  The 24 MiB budget
    # is conservative so the same sizing also fits v7x (64 MiB physical VMEM).
    per_row = 6 * t_len * c_len * itemsize
    return int(max(1, min(b_total, vmem_budget_bytes // max(per_row, 1))))


def fused_autoaug_mix(x, m, alpha, noise, jcoef, *, block_b=None):
    """aug1 = (M @_time x) + alpha * x + jcoef * noise, fused in one Pallas kernel."""
    b_total, t_len, c_len = x.shape
    if block_b is None:
        block_b = _pick_block_b(b_total, t_len, c_len, x.dtype.itemsize)
    grid = (pl.cdiv(b_total, block_b),)
    blk3 = (block_b, t_len, c_len)
    return pl.pallas_call(
        _autoaug_mix_kernel,
        out_shape=jax.ShapeDtypeStruct((b_total, t_len, c_len), x.dtype),
        grid=grid,
        in_specs=[
            pl.BlockSpec(memory_space=pltpu.MemorySpace.SMEM),       # jcoef (1,)
            pl.BlockSpec((t_len, t_len), lambda i: (0, 0)),          # M, resident
            pl.BlockSpec(blk3, lambda i: (i, 0, 0)),                 # x
            pl.BlockSpec((block_b, 1, c_len), lambda i: (i, 0, 0)),  # alpha
            pl.BlockSpec(blk3, lambda i: (i, 0, 0)),                 # noise
        ],
        out_specs=pl.BlockSpec(blk3, lambda i: (i, 0, 0)),
        compiler_params=pltpu.CompilerParams(
            dimension_semantics=("parallel",),   # shards the batch over v7x's 2 TCs
            vmem_limit_bytes=48 * 1024 * 1024,
        ),
    )(jcoef, m, x, alpha, noise)


# ------------------ time-mixing matrix for the linear augs -------------------
def _resample_rows(pos, src_len, t_total, dtype):
    """Rows of a (T, T) matrix implementing linear interpolation at `pos` over
    source time indices [0, src_len)."""
    lo = jnp.floor(pos).astype(jnp.int32)
    hi = jnp.clip(lo + 1, 0, src_len - 1)
    frac = (pos - lo.astype(pos.dtype)).astype(dtype)
    return ((1.0 - frac)[:, None] * jax.nn.one_hot(lo, t_total, dtype=dtype)
            + frac[:, None] * jax.nn.one_hot(hi, t_total, dtype=dtype))


def _time_mixing_matrix(p, t_len, dtype=jnp.float32):
    """M = sum over the time-linear augmentations of p_a * L_a   (shape (T, T)).

    Covers: subsequence (0), cutout (1), jitter identity part (2), time_warp (4),
    window_slice (5), window_warp (6).  scaling (3) and the jitter noise are
    handled elementwise inside the kernel.
    """
    t = jnp.arange(t_len)
    eye = jnp.eye(t_len, dtype=dtype)
    # subsequence: keep a contiguous half of the sequence, zero the rest
    smask = ((t >= t_len // 4) & (t < t_len // 4 + t_len // 2)).astype(dtype)
    # cutout: zero a time window
    cmask = 1.0 - ((t >= t_len // 3) & (t < t_len // 3 + t_len // 4)).astype(dtype)
    l_sub = eye * smask[:, None]
    l_cut = eye * cmask[:, None]
    l_jit = eye
    # time_warp proxy: circular shift by 2 along time
    l_tw = jax.nn.one_hot((t - 2) % t_len, t_len, dtype=dtype)
    # window_slice: crop 80% of the sequence and linearly resize back to T
    ws = max(int(0.8 * t_len), 2)
    pos_ws = jnp.linspace(0.0, ws - 1.0, t_len)
    l_ws = _resample_rows(pos_ws, ws, t_len, dtype)
    # window_warp: slow down a window (speed 0.5) and resample back to length T
    speed = jnp.where((t >= t_len // 4) & (t < t_len // 2), 0.5, 1.0)
    cum = jnp.cumsum(speed) - speed[0]
    pos_ww = cum / cum[-1] * (t_len - 1.0)
    l_ww = _resample_rows(pos_ww, t_len, t_len, dtype)
    return (p[0] * l_sub + p[1] * l_cut + p[2] * l_jit
            + p[4] * l_tw + p[5] * l_ws + p[6] * l_ww).astype(dtype)


# ------------------------------ forward pass ---------------------------------
def auto_aug_forward(x, weight, aug_key, *, aug_p1=0.2, aug_p2=0.0, block_b=None):
    """Eval-mode AutoAUG.forward:
         para = softmax(weight, -1)
         aug1 = sum_a para[0, a] * aug_a(x)    (single fused Pallas kernel)
         aug2 = x.clone()
    # TODO(synk): training-mode branches (host-side random.random() gate, the
    # logistic-noise get_sampling and .cuda()) are host RNG / control flow with no
    # Pallas equivalent; eval-mode semantics are implemented.
    # TODO(synk): the seven augmentation classes are not defined in the provided
    # module source; deterministic JAX proxies with standard TS-augmentation
    # semantics are used (same proxies as the pure-JAX reference below).
    """
    if aug_p1 == 0.0 and aug_p2 == 0.0:
        return x, x
    b_total, t_len, c_len = x.shape
    para = jax.nn.softmax(weight, axis=-1)                  # (2, A)
    p = para[0].astype(jnp.float32)

    k_jit, k_scale = jax.random.split(aug_key, 2)
    # Six time-linear augs folded into one tiny (T, T) mixing matrix.
    m = _time_mixing_matrix(p, t_len, jnp.float32)
    # scaling aug -> per-(batch, channel) multiplier, pre-weighted by p[scaling]
    scale = 1.0 + _SCALE_SIGMA * jax.random.normal(k_scale, (b_total, 1, c_len), jnp.float32)
    alpha = (p[3] * scale).astype(jnp.float32)
    # jitter noise (the identity part of jitter already lives inside M)
    noise = jax.random.normal(k_jit, x.shape, jnp.float32)
    jcoef = (p[2] * _JITTER_SIGMA).reshape(1).astype(jnp.float32)

    aug1 = fused_autoaug_mix(x, m, alpha, noise, jcoef, block_b=block_b)
    aug2 = x
    return aug1, aug2


# --------------------------- pure-JAX reference -------------------------------
def _linear_time_resample(x, pos):
    tp = x.shape[1]
    lo = jnp.floor(pos).astype(jnp.int32)
    hi = jnp.clip(lo + 1, 0, tp - 1)
    frac = (pos - lo.astype(pos.dtype))[None, :, None]
    return x[:, lo, :] * (1.0 - frac) + x[:, hi, :] * frac


def reference_forward(x, weight, aug_key):
    """Unfused reference: materializes all 7 augmented copies, weighted sum."""
    b_total, t_len, c_len = x.shape
    para = jax.nn.softmax(weight, axis=-1)
    t = jnp.arange(t_len)
    k_jit, k_scale = jax.random.split(aug_key, 2)
    augs = []
    smask = ((t >= t_len // 4) & (t < t_len // 4 + t_len // 2)).astype(x.dtype)[None, :, None]
    augs.append(x * smask)
    cmask = 1.0 - ((t >= t_len // 3) & (t < t_len // 3 + t_len // 4)).astype(x.dtype)[None, :, None]
    augs.append(x * cmask)
    augs.append(x + _JITTER_SIGMA * jax.random.normal(k_jit, x.shape, x.dtype))
    augs.append(x * (1.0 + _SCALE_SIGMA * jax.random.normal(k_scale, (b_total, 1, c_len), x.dtype)))
    augs.append(jnp.roll(x, shift=2, axis=1))
    ws = max(int(0.8 * t_len), 2)
    pos_ws = jnp.linspace(0.0, ws - 1.0, t_len)
    augs.append(_linear_time_resample(x[:, :ws, :], pos_ws))
    speed = jnp.where((t >= t_len // 4) & (t < t_len // 2), 0.5, 1.0)
    cum = jnp.cumsum(speed) - speed[0]
    pos_ww = cum / cum[-1] * (t_len - 1.0)
    augs.append(_linear_time_resample(x, pos_ww))
    assert len(augs) == N_AUGS
    xs1 = jnp.stack(augs, 0)
    # Elementwise weighted sum (avoids TPU default-precision dot in the reference).
    aug1 = jnp.sum(para[0][:, None, None, None] * xs1, axis=0)
    return aug1, x


if __name__ == "__main__":
    key = jax.random.PRNGKey(0)
    k_x, k_w, k_aug = jax.random.split(key, 3)
    B, T, C = 2, 16, 8
    x = jax.random.normal(k_x, (B, T, C), jnp.float32)
    # Parameter init matches torch.nn.init.normal_(weight, mean=0.0, std=0.01), shape (2, n_augs)
    weight = 0.01 * jax.random.normal(k_w, (2, N_AUGS), jnp.float32)

    # block_b=1 -> grid=(2,): exercises the parallel grid axis even at demo size.
    aug1, aug2 = auto_aug_forward(x, weight, k_aug, block_b=1)
    jax.block_until_ready((aug1, aug2))

    ref1, ref2 = reference_forward(x, weight, k_aug)
    # The kernel reassociates the weighted sum (time-mixing-matrix form); the
    # tolerance only needs to cover f32 reassociation error (~1e-6 here).
    assert np.allclose(np.asarray(aug1), np.asarray(ref1), atol=1e-4, rtol=1e-4), (
        float(np.max(np.abs(np.asarray(aug1) - np.asarray(ref1)))))
    assert np.allclose(np.asarray(aug2), np.asarray(x))
    print("KERNEL_OK")
</pallas_src>

<mosaic_0001>
module attributes {stable_mosaic.version = 11 : i64} {
  func.func @_autoaug_mix_kernel(%arg0: i32, %arg1: memref<1xf32, #tpu.memory_space<smem>>, %arg2: memref<16x16xf32, #tpu.memory_space<vmem>>, %arg3: memref<1x16x8xf32, #tpu.memory_space<vmem>>, %arg4: memref<1x1x8xf32, #tpu.memory_space<vmem>>, %arg5: memref<1x16x8xf32, #tpu.memory_space<vmem>>, %arg6: memref<1x16x8xf32, #tpu.memory_space<vmem>>) attributes {dimension_semantics = [#tpu.dimension_semantics<parallel>], iteration_bounds = array<i64: 2>, scalar_prefetch = 0 : i64, scratch_operands = 0 : i64, tpu.core_type = #tpu.core_type<tc>, window_params = [{transform_indices = @transform_0, window_bounds = array<i64: 1>}, {pipeline_mode = #tpu.pipeline_mode<synchronous>, transform_indices = @transform_1, window_bounds = array<i64: 16, 16>}, {transform_indices = @transform_2, window_bounds = array<i64: 1, 16, 8>}, {transform_indices = @transform_3, window_bounds = array<i64: 1, 1, 8>}, {transform_indices = @transform_4, window_bounds = array<i64: 1, 16, 8>}, {transform_indices = @transform_5, window_bounds = array<i64: 1, 16, 8>}]} {
    %c0 = arith.constant 0 : index
    %c0_0 = arith.constant 0 : index
    %0 = vector.load %arg2[%c0, %c0_0] : memref<16x16xf32, #tpu.memory_space<vmem>>, vector<16x16xf32>
    %c0_1 = arith.constant 0 : index
    %1 = memref.load %arg1[%c0_1] : memref<1xf32, #tpu.memory_space<smem>>
    %c0_i32 = arith.constant 0 : i32
    %2 = arith.index_cast %c0_i32 : i32 to index
    %c0_2 = arith.constant 0 : index
    %c0_3 = arith.constant 0 : index
    %3 = vector.load %arg3[%2, %c0_2, %c0_3] : memref<1x16x8xf32, #tpu.memory_space<vmem>>, vector<1x16x8xf32>
    %4 = vector.shape_cast %3 : vector<1x16x8xf32> to vector<16x8xf32>
    %5 = vector.shape_cast %0 : vector<16x16xf32> to vector<16x16x1xf32>
    %6 = vector.shape_cast %4 : vector<16x8xf32> to vector<1x16x8xf32>
    %7 = vector.broadcast %5 : vector<16x16x1xf32> to vector<16x16x8xf32>
    %8 = vector.broadcast %6 : vector<1x16x8xf32> to vector<16x16x8xf32>
    %9 = arith.mulf %7, %8 : vector<16x16x8xf32>
    %cst = arith.constant dense<0.000000e+00> : vector<16x8xf32>
    %10 = vector.multi_reduction <add>, %9, %cst [1] : vector<16x16x8xf32> to vector<16x8xf32>
    %11 = arith.index_cast %c0_i32 : i32 to index
    %c0_4 = arith.constant 0 : index
    %c0_5 = arith.constant 0 : index
    %12 = vector.load %arg4[%11, %c0_4, %c0_5] : memref<1x1x8xf32, #tpu.memory_space<vmem>>, vector<1x1x8xf32>
    %13 = vector.shape_cast %12 : vector<1x1x8xf32> to vector<1x8xf32>
    %14 = vector.broadcast %13 : vector<1x8xf32> to vector<16x8xf32>
    %15 = arith.mulf %14, %4 : vector<16x8xf32>
    %16 = arith.index_cast %c0_i32 : i32 to index
    %c0_6 = arith.constant 0 : index
    %c0_7 = arith.constant 0 : index
    %17 = vector.load %arg5[%16, %c0_6, %c0_7] : memref<1x16x8xf32, #tpu.memory_space<vmem>>, vector<1x16x8xf32>
    %18 = vector.shape_cast %17 : vector<1x16x8xf32> to vector<16x8xf32>
    %19 = vector.broadcast %1 : f32 to vector<16x8xf32>
    %20 = arith.mulf %19, %18 : vector<16x8xf32>
    %21 = arith.addf %10, %15 : vector<16x8xf32>
    %22 = arith.addf %21, %20 : vector<16x8xf32>
    %23 = arith.index_cast %c0_i32 : i32 to index
    %c0_8 = arith.constant 0 : index
    %c0_9 = arith.constant 0 : index
    %24 = vector.load %arg6[%23, %c0_8, %c0_9] : memref<1x16x8xf32, #tpu.memory_space<vmem>>, vector<1x16x8xf32>
    %25 = vector.shape_cast %24 : vector<1x16x8xf32> to vector<16x8xf32>
    %26 = vector.shape_cast %22 : vector<16x8xf32> to vector<1x16x8xf32>
    tpu.vector_store %arg6[%23, %c0_8, %c0_9], %26 {strides = array<i32>} : memref<1x16x8xf32, #tpu.memory_space<vmem>>, vector<1x16x8xf32>,
    %c1_i32 = arith.constant 1 : i32
    return
  }
  func.func @transform_0(%arg0: i32) -> i32 {
    %c0_i32 = arith.constant 0 : i32
    %c0_i32_0 = arith.constant 0 : i32
    return %c0_i32 : i32
  }
  func.func @transform_1(%arg0: i32) -> (i32, i32) {
    %c0_i32 = arith.constant 0 : i32
    %c0_i32_0 = arith.constant 0 : i32
    %c0_i32_1 = arith.constant 0 : i32
    return %c0_i32, %c0_i32_0 : i32, i32
  }
  func.func @transform_2(%arg0: i32) -> (i32, i32, i32) {
    %c0_i32 = arith.constant 0 : i32
    %c0_i32_0 = arith.constant 0 : i32
    %c0_i32_1 = arith.constant 0 : i32
    return %arg0, %c0_i32, %c0_i32_0 : i32, i32, i32
  }
  func.func @transform_3(%arg0: i32) -> (i32, i32, i32) {
    %c0_i32 = arith.constant 0 : i32
    %c0_i32_0 = arith.constant 0 : i32
    %c0_i32_1 = arith.constant 0 : i32
    return %arg0, %c0_i32, %c0_i32_0 : i32, i32, i32
  }
  func.func @transform_4(%arg0: i32) -> (i32, i32, i32) {
    %c0_i32 = arith.constant 0 : i32
    %c0_i32_0 = arith.constant 0 : i32
    %c0_i32_1 = arith.constant 0 : i32
    return %arg0, %c0_i32, %c0_i32_0 : i32, i32, i32
  }
  func.func @transform_5(%arg0: i32) -> (i32, i32, i32) {
    %c0_i32 = arith.constant 0 : i32
    %c0_i32_0 = arith.constant 0 : i32
    %c0_i32_1 = arith.constant 0 : i32
    return %arg0, %c0_i32, %c0_i32_0 : i32, i32, i32
  }
}

</mosaic_0001>

<bundles_post_ra>
// kernel: tpu_custom_call.1
= control target key start
LH: loop header
LB: loop body
LE: loop exit
PB: predicated region body
PF: predicated region fallthrough
CT: control target
= control target key end

     0   :  { %s925_s20 = smov 0   ;;  %s1159_s0 = inlined_call_operand.<no memory space> [shape: f32[1], index: 0, kind: input, shape index: {}]   ;;  %s1160_s1 = inlined_call_operand.vmem [shape: f32[16,16], index: 1, kind: input, shape index: {}]   ;;  %s1161_s2 = inlined_call_operand.vmem [shape: f32[2,16,8], index: 2, kind: input, shape index: {}]   ;;  %s1162_s3 = inlined_call_operand.vmem [shape: f32[2,1,8], index: 3, kind: input, shape index: {}]   ;;  %s1163_s4 = inlined_call_operand.vmem [shape: f32[2,16,8], index: 4, kind: input, shape index: {}]   ;;  %s1164_s5 = inlined_call_operand.vmem [shape: f32[2,16,8], index: 5, kind: output, shape index: {}]  }
   0x1   :  { %10 = sst [smem:[#allocation2]] %s1159_s0 }
   0x2 LB: > { %s859_s21 = sadd.s32 4294967295, %s890_s20   ;;  %p863_p0 = scmp.ge.s32.totalorder %s890_s20, 1  ;;  %s890_s20 = sphi %s925_s20, %s16_s20  }
   0x3   : > { %p206_p1 = scmp.lt.s32.totalorder %s890_s20, 3 }
   0x5   : > { %p207_p2 = pnand %p863_p0, %p206_p1 }
   0x6   : > { %v265_v0 = vlaneseq (!%p207_p2)  ;;  %v261_v2 = vld [vmem:[%s1160_s1 + $0x8] sm:$0xff] (!%p207_p2)  ;;  %v260_v3 = vld [vmem:[%s1160_s1] sm:$0xff] (!%p207_p2)  ;;  %p242_p3 = scmp.lt.s32.totalorder (!%p207_p2), %s859_s21, 1  ;;  %vm473_vm0 = vcmask (!%p207_p2), 64512   ;;  %s262_s29 = sld [smem:[#allocation2]] (!%p207_p2)  ;;  %vm745_vm1 = vcmask (!%p207_p2), 1041409  }
   0x7   : > { %210 = sbr.rel (%p207_p2) target bundleno = 215 (0xd7), region = 40  ;;  %vm748_vm2 = vcmask (!%p207_p2), 1042434   ;;  %vm751_vm3 = vcmask (!%p207_p2), 1043459   ;;  %vm754_vm4 = vcmask (!%p207_p2), 1044484   ;;  %vm757_vm5 = vcmask (!%p207_p2), 1045509  }
   0x8   : > { %v266_v1 = vshrl.u32 (!%p207_p2), %v265_v0, 7  ;;  %vm760_vm6 = vcmask (!%p207_p2), 1046534   ;;  %vm763_vm7 = vcmask (!%p207_p2), 1047559  }
   0xa   : > { %v278_v4 = vsub.s32 (!%p207_p2), 1, %v266_v1  ;;  %v289_v7 = vsub.s32 (!%p207_p2), 2, %v266_v1  ;;  %v267_v10 = vsub.s32 (!%p207_p2), 0, %v266_v1  ;;  %v300_v12 = vsub.s32 (!%p207_p2), 3, %v266_v1 }
   0xb   : > { %v311_v16 = vsub.s32 (!%p207_p2), 4, %v266_v1  ;;  %v322_v19 = vsub.s32 (!%p207_p2), 5, %v266_v1  ;;  %v333_v22 = vsub.s32 (!%p207_p2), 6, %v266_v1  ;;  %v344_v25 = vsub.s32 (!%p207_p2), 7, %v266_v1 }
   0xc   : > { %v367_v5 = vrot.slane (!%p207_p2), %v261_v2, %v278_v4  ;;  %v279_v6 = vrot.slane (!%p207_p2), %v260_v3, %v278_v4  ;;  %v290_v8 = vrot.slane (!%p207_p2), %v260_v3, %v289_v7  ;;  %v378_v9 = vrot.slane (!%p207_p2), %v261_v2, %v289_v7 }
   0xd   : > { %v268_v11 = vrot.slane (!%p207_p2), %v260_v3, %v267_v10  ;;  %v301_v13 = vrot.slane (!%p207_p2), %v260_v3, %v300_v12  ;;  %v356_v14 = vrot.slane (!%p207_p2), %v261_v2, %v267_v10  ;;  %v389_v15 = vrot.slane (!%p207_p2), %v261_v2, %v300_v12 }
   0xe   : > { %369 = vbcast.lane.b32.xlu1 %v367_v5, 256  ;;  %281 = vbcast.lane.b32.xlu0 %v279_v6, 256  ;;  %v312_v17 = vrot.slane %v260_v3, %v311_v16  ;;  %v400_v18 = vrot.slane %v261_v2, %v311_v16  ;;  %v323_v20 = vrot.slane %v260_v3, %v322_v19  ;;  %s1170_s21 = smov (!%p242_p3, %s859_s21), 1  ;;  %v629_v50 = vstv %s262_s29 }
   0xf   : > { %v411_v21 = vrot.slane %v261_v2, %v322_v19  ;;  %v334_v23 = vrot.slane %v260_v3, %v333_v22  ;;  %v422_v24 = vrot.slane %v261_v2, %v333_v22  ;;  %v345_v26 = vrot.slane %v260_v3, %v344_v25  ;;  %s943_s25 = sshll.u32 %s1170_s21, 4  ;;  %s249_s7 = scalar_lea.vmem %s1162_s3, %s1170_s21 }
  0x10   : > { %v433_v27 = vrot.slane %v261_v2, %v344_v25  ;;  %s246_s28 = scalar_lea.vmem %s1161_s2, %s943_s25  ;;  %s254_s10 = scalar_lea.vmem %s1163_s4, %s943_s25  ;;  %v870_v49 = vld [vmem:[%s249_s7] ss:$0 sm:$0xff] }
  0x11   : > { %v949_v30 = vld [vmem:[%s246_s28] sm:$0xff]  ;;  %v951_v31 = vld [vmem:[%s246_s28 + $0x8] sm:$0xff]  ;;  %s259_s13 = scalar_lea.vmem %s1164_s5, %s943_s25 }
  0x12   : > { %373 = vbcast.lane.b32.xlu1 %v367_v5, 264  ;;  %285 = vbcast.lane.b32.xlu0 %v279_v6, 264  ;;  %v628_v51 = vld [vmem:[%s254_s10 + $0x8] sm:$0xff]  ;;  %v627_v55 = vld [vmem:[%s254_s10] sm:$0xff]  ;;  %v971_v58 = vmul.f32 %v870_v49, %v951_v31  ;;  %v976_v61 = vmul.f32 %v870_v49, %v949_v30 }
  0x13   : > { %v973_v60 = vmul.f32 %v629_v50, %v628_v51  ;;  %v978_v63 = vmul.f32 %v629_v50, %v627_v55 }
  0x14   : > { %v641_v6 = vrot.slane %v971_v58, 1  ;;  %v636_v25 = vrot.slane %v976_v61, 3  ;;  %v639_v50 = vrot.slane %v976_v61, 6 }
  0x15   : > { %v689_v10 = vrot.slane %v973_v60, 1  ;;  %v683_v16 = vrot.slane %v978_v63, 2  ;;  %v693_v49 = vrot.slane %v973_v60, 5 }
  0x16   : > { %296 = vbcast.lane.b32.xlu1 %v290_v8, 264  ;;  %292 = vbcast.lane.b32.xlu0 %v290_v8, 256 }
  0x1a   : > { %384 = vbcast.lane.b32.xlu1 %v378_v9, 264  ;;  %380 = vbcast.lane.b32.xlu0 %v378_v9, 256 }
  0x1e   : > { %274 = vbcast.lane.b32.xlu1 %v268_v11, 264  ;;  %270 = vbcast.lane.b32.xlu0 %v268_v11, 256  ;;  %v634_v11 = vrot.slane %v976_v61, 1 }
  0x22   : > { %307 = vbcast.lane.b32.xlu1 %v301_v13, 264  ;;  %303 = vbcast.lane.b32.xlu0 %v301_v13, 256 }
  0x26   : > { %362 = vbcast.lane.b32.xlu1 %v356_v14, 264  ;;  %358 = vbcast.lane.b32.xlu0 %v356_v14, 256  ;;  %v682_v14 = vrot.slane %v978_v63, 1 }
  0x2a   : > { %395 = vbcast.lane.b32.xlu1 %v389_v15, 264  ;;  %391 = vbcast.lane.b32.xlu0 %v389_v15, 256  ;;  %v635_v15 = vrot.slane %v976_v61, 2 }
  0x2e   : > { %318 = vbcast.lane.b32.xlu1 %v312_v17, 264  ;;  %314 = vbcast.lane.b32.xlu0 %v312_v17, 256  ;;  %v642_v17 = vrot.slane %v971_v58, 2 }
  0x32   : > { %406 = vbcast.lane.b32.xlu1 %v400_v18, 264  ;;  %402 = vbcast.lane.b32.xlu0 %v400_v18, 256  ;;  %v690_v18 = vrot.slane %v973_v60, 2 }
  0x36   : > { %329 = vbcast.lane.b32.xlu1 %v323_v20, 264  ;;  %325 = vbcast.lane.b32.xlu0 %v323_v20, 256 }
  0x3a   : > { %417 = vbcast.lane.b32.xlu1 %v411_v21, 264  ;;  %413 = vbcast.lane.b32.xlu0 %v411_v21, 256 }
  0x3e   : > { %340 = vbcast.lane.b32.xlu1 %v334_v23, 264  ;;  %336 = vbcast.lane.b32.xlu0 %v334_v23, 256 }
  0x42   : > { %428 = vbcast.lane.b32.xlu1 %v422_v24, 264  ;;  %424 = vbcast.lane.b32.xlu0 %v422_v24, 256 }
  0x46   : > { %351 = vbcast.lane.b32.xlu1 %v345_v26, 264  ;;  %347 = vbcast.lane.b32.xlu0 %v345_v26, 256  ;;  %v684_v26 = vrot.slane %v978_v63, 3 }
  0x4a   : > { %439 = vbcast.lane.b32.xlu1 %v433_v27, 264  ;;  %435 = vbcast.lane.b32.xlu0 %v433_v27, 256 }
  0x80   : > { %v370_v28 = vpop.permute.xlu1 %369  ;;  %v282_v29 = vpop.permute.xlu0 %281 }
  0x81   : > { %v459_v34 = vmul.f32 %v370_v28, %v949_v30  ;;  %v443_v37 = vmul.f32 %v282_v29, %v949_v30  ;;  %v643_v29 = vrot.slane %v971_v58, 3 }
  0x83   : > { %v555_v42 = vsel %vm473_vm0, %v459_v34, 0.0  ;;  %v483_v43 = vsel %vm473_vm0, %v443_v37, 0.0 }
  0x84   : > { %v374_v32 = vpop.permute.xlu1 %373  ;;  %v286_v33 = vpop.permute.xlu0 %285 }
  0x85   : > { %v460_v35 = vmul.f32 %v374_v32, %v951_v31  ;;  %v444_v36 = vmul.f32 %v286_v33, %v951_v31  ;;  %v691_v32 = vrot.slane %v973_v60, 3 }
  0x87   : > { %v556_v38 = vsel %vm473_vm0, %v460_v35, 0.0  ;;  %v484_v39 = vsel %vm473_vm0, %v444_v36, 0.0 }
  0x88   : > { %v297_v40 = vpop.permute.xlu1 %296  ;;  %v293_v41 = vpop.permute.xlu0 %292  ;;  %v557_v44 = vadd.f32 %v556_v38, %v555_v42  ;;  %v485_v45 = vadd.f32 %v484_v39, %v483_v43  ;;  %v644_v42 = vrot.slane %v971_v58, 4  ;;  %v692_v43 = vrot.slane %v973_v60, 4 }
  0x89   : > { %v446_v53 = vmul.f32 %v297_v40, %v951_v31  ;;  %v445_v54 = vmul.f32 %v293_v41, %v949_v30  ;;  %v637_v40 = vrot.slane %v976_v61, 4  ;;  %v685_v41 = vrot.slane %v978_v63, 4 }
  0x8a   : > { %v558_v48 = vrot.slane %v557_v44, 4  ;;  %v486_v52 = vrot.slane %v485_v45, 4 }
  0x8b   : > { %v493_v0 = vsel %vm473_vm0, %v446_v53, 0.0  ;;  %v492_v1 = vsel %vm473_vm0, %v445_v54, 0.0 }
  0x8c   : > { %v385_v46 = vpop.permute.xlu1 %384  ;;  %v381_v47 = vpop.permute.xlu0 %380  ;;  %v559_v59 = vadd.f32 %v558_v48, %v557_v44  ;;  %v487_v62 = vadd.f32 %v486_v52, %v485_v45  ;;  %v494_v12 = vadd.f32 %v493_v0, %v492_v1  ;;  %v638_v44 = vrot.slane %v976_v61, 5 }
  0x8d   : > { %v462_v7 = vmul.f32 %v385_v46, %v951_v31  ;;  %v461_v8 = vmul.f32 %v381_v47, %v949_v30  ;;  %v686_v45 = vrot.slane %v978_v63, 5  ;;  %v645_v46 = vrot.slane %v971_v58, 5 }
  0x8e   : > { %v560_v9 = vrot.slane %v559_v59, 2  ;;  %v488_v13 = vrot.slane %v487_v62, 2  ;;  %v495_v28 = vrot.slane %v494_v12, 4 }
  0x8f   : > { %v565_v23 = vsel %vm473_vm0, %v462_v7, 0.0  ;;  %v564_v24 = vsel %vm473_vm0, %v461_v8, 0.0 }
  0x90   : > { %v275_v56 = vpop.permute.xlu1 %274  ;;  %v271_v57 = vpop.permute.xlu0 %270  ;;  %v561_v27 = vadd.f32 %v560_v9, %v559_v59  ;;  %v489_v33 = vadd.f32 %v488_v13, %v487_v62  ;;  %v566_v37 = vadd.f32 %v565_v23, %v564_v24  ;;  %v496_v48 = vadd.f32 %v495_v28, %v494_v12 }
  0x91   : > { %v442_v2 = vmul.f32 %v275_v56, %v951_v31  ;;  %v441_v3 = vmul.f32 %v271_v57, %v949_v30  ;;  %v646_v9 = vrot.slane %v971_v58, 6 }
  0x92   : > { %v562_v47 = vrot.slane %v561_v27, 1  ;;  %v490_v51 = vrot.slane %v489_v33, 1  ;;  %v567_v55 = vrot.slane %v566_v37, 4  ;;  %v497_v7 = vrot.slane %v496_v48, 2 }
  0x93   : > { %v475_v19 = vsel %vm473_vm0, %v442_v2, 0.0  ;;  %v474_v20 = vsel %vm473_vm0, %v441_v3, 0.0 }
  0x94   : > { %v308_v4 = vpop.permute.xlu1 %307  ;;  %v304_v5 = vpop.permute.xlu0 %303  ;;  %v476_v34 = vadd.f32 %v475_v19, %v474_v20  ;;  %v491_v12 = vadd.f32 %v490_v51, %v489_v33 }
  0x95   : > { %v448_v35 = vmul.f32 %v308_v4, %v951_v31  ;;  %v447_v36 = vmul.f32 %v304_v5, %v949_v30  ;;  %v687_v4 = vrot.slane %v978_v63, 6  ;;  %v563_v5 = vadd.f32 %v562_v47, %v561_v27 }
  0x96   : > { %v477_v52 = vrot.slane %v476_v34, 4 }
  0x97   : > { %v502_v53 = vsel %vm473_vm0, %v448_v35, 0.0  ;;  %v501_v54 = vsel %vm473_vm0, %v447_v36, 0.0  ;;  %v673_v51 = vadd.f32 %v641_v6, %v563_v5 }
  0x98   : > { %v363_v21 = vpop.permute.xlu1 %362  ;;  %v359_v22 = vpop.permute.xlu0 %358  ;;  %v503_v8 = vadd.f32 %v502_v53, %v501_v54  ;;  %v478_v13 = vadd.f32 %v477_v52, %v476_v34  ;;  %v498_v34 = vadd.f32 %v497_v7, %v496_v48 }
  0x99   : > { %v458_v56 = vmul.f32 %v363_v21, %v951_v31  ;;  %v457_v57 = vmul.f32 %v359_v22, %v949_v30  ;;  %v568_v21 = vadd.f32 %v567_v55, %v566_v37  ;;  %v640_v37 = vrot.slane %v976_v61, 7 }
  0x9a   : > { %v479_v52 = vrot.slane %v478_v13, 2  ;;  %v665_v55 = vadd.f32 %v634_v11, %v491_v12  ;;  %v1045_v11 = vadd.f32 %v689_v10, %v673_v51 }
  0x9b   : > { %v547_v22 = vsel %vm473_vm0, %v458_v56, 0.0  ;;  %v546_v23 = vsel %vm473_vm0, %v457_v57, 0.0 }
  0x9c   : > { %v396_v38 = vpop.permute.xlu1 %395  ;;  %v392_v39 = vpop.permute.xlu0 %391  ;;  %v548_v56 = vadd.f32 %v547_v22, %v546_v23  ;;  %v480_v12 = vadd.f32 %v479_v52, %v478_v13  ;;  %v1051_v23 = vadd.f32 %v682_v14, %v665_v55 }
  0x9d   : > { %v464_v59 = vmul.f32 %v396_v38, %v951_v31  ;;  %v463_v1 = vmul.f32 %v392_v39, %v949_v30  ;;  %v504_v39 = vrot.slane %v503_v8, 4 }
  0x9f   : > { %v574_v24 = vsel %vm473_vm0, %v464_v59, 0.0  ;;  %v573_v27 = vsel %vm473_vm0, %v463_v1, 0.0  ;;  %v505_v5 = vadd.f32 %v504_v39, %v503_v8 }
  0xa0   : > { %v319_v62 = vpop.permute.xlu1 %318  ;;  %v315_v0 = vpop.permute.xlu0 %314  ;;  %v575_v57 = vadd.f32 %v574_v24, %v573_v27  ;;  %v549_v24 = vrot.slane %v548_v56, 4 }
  0xa1   : > { %v450_v2 = vmul.f32 %v319_v62, %v951_v31  ;;  %v449_v3 = vmul.f32 %v315_v0, %v949_v30  ;;  %v569_v0 = vrot.slane %v568_v21, 2  ;;  %v506_v51 = vrot.slane %v505_v5, 2 }
  0xa3   : > { %v511_v19 = vsel %vm473_vm0, %v450_v2, 0.0  ;;  %v510_v20 = vsel %vm473_vm0, %v449_v3, 0.0  ;;  %v499_v3 = vrot.slane %v498_v34, 1 }
  0xa4   : > { %v407_v28 = vpop.permute.xlu1 %406  ;;  %v403_v35 = vpop.permute.xlu0 %402  ;;  %v512_v36 = vadd.f32 %v511_v19, %v510_v20 }
  0xa5   : > { %v466_v38 = vmul.f32 %v407_v28, %v951_v31  ;;  %v465_v33 = vmul.f32 %v403_v35, %v949_v30  ;;  %v576_v28 = vrot.slane %v575_v57, 4  ;;  %v500_v13 = vadd.f32 %v499_v3, %v498_v34 }
  0xa6   : > { %v513_v1 = vrot.slane %v512_v36, 4 }
  0xa7   : > { %v583_v53 = vsel %vm473_vm0, %v466_v38, 0.0  ;;  %v582_v54 = vsel %vm473_vm0, %v465_v33, 0.0  ;;  %v570_v38 = vadd.f32 %v569_v0, %v568_v21 }
  0xa8   : > { %v330_v59 = vpop.permute.xlu1 %329  ;;  %v326_v48 = vpop.permute.xlu0 %325  ;;  %v584_v7 = vadd.f32 %v583_v53, %v582_v54  ;;  %v514_v33 = vadd.f32 %v513_v1, %v512_v36 }
  0xa9   : > { %v452_v2 = vmul.f32 %v330_v59, %v951_v31  ;;  %v451_v6 = vmul.f32 %v326_v48, %v949_v30  ;;  %v481_v59 = vrot.slane %v480_v12, 1  ;;  %v550_v48 = vadd.f32 %v549_v24, %v548_v56 }
  0xaa   : > { %v585_v52 = vrot.slane %v584_v7, 4  ;;  %v571_v1 = vrot.slane %v570_v38, 1  ;;  %v1063_v56 = vadd.f32 %v635_v15, %v500_v13 }
  0xab   : > { %v520_v20 = vsel %vm473_vm0, %v452_v2, 0.0  ;;  %v519_v22 = vsel %vm473_vm0, %v451_v6, 0.0  ;;  %v577_v2 = vadd.f32 %v576_v28, %v575_v57  ;;  %v482_v28 = vadd.f32 %v481_v59, %v480_v12 }
  0xac   : > { %v521_v35 = vadd.f32 %v520_v20, %v519_v22  ;;  %v418_v8 = vpop.permute.xlu1 %417  ;;  %v414_v27 = vpop.permute.xlu0 %413  ;;  %v515_v20 = vrot.slane %v514_v33, 2  ;;  %v507_v22 = vadd.f32 %v506_v51, %v505_v5 }
  0xad   : > { %v468_v39 = vmul.f32 %v418_v8, %v951_v31  ;;  %v467_v10 = vmul.f32 %v414_v27, %v949_v30  ;;  %v586_v8 = vadd.f32 %v585_v52, %v584_v7 }
  0xae   : > { %v522_v53 = vrot.slane %v521_v35, 4  ;;  %v516_v5 = vadd.f32 %v515_v20, %v514_v33  ;;  %v508_v15 = vrot.slane %v507_v22, 1 }
  0xaf   : > { %v592_v14 = vsel %vm473_vm0, %v468_v39, 0.0  ;;  %v591_v55 = vsel %vm473_vm0, %v467_v10, 0.0  ;;  %v744_v39 = vrot.slane %v1051_v23, 7  ;;  %v578_v10 = vrot.slane %v577_v2, 2 }
  0xb0   : > { %v523_v6 = vadd.f32 %v522_v53, %v521_v35  ;;  %v593_v21 = vadd.f32 %v592_v14, %v591_v55  ;;  %v341_v36 = vpop.permute.xlu1 %340  ;;  %v337_v0 = vpop.permute.xlu0 %336  ;;  %v551_v35 = vrot.slane %v550_v48, 2  ;;  %v587_v13 = vrot.slane %v586_v8, 2 }
  0xb1   : > { %v454_v34 = vmul.f32 %v341_v36, %v951_v31  ;;  %v453_v3 = vmul.f32 %v337_v0, %v949_v30  ;;  %v1069_v36 = vadd.f32 %v571_v1, %v570_v38  ;;  %v579_v33 = vadd.f32 %v578_v10, %v577_v2 }
  0xb2   : > { %v524_v27 = vrot.slane %v523_v6, 2  ;;  %v594_v19 = vrot.slane %v593_v21, 4 }
  0xb3   : > { %v529_v57 = vsel %vm473_vm0, %v454_v34, 0.0  ;;  %v528_v24 = vsel %vm473_vm0, %v453_v3, 0.0 }
  0xb4   : > { %v595_v53 = vadd.f32 %v594_v19, %v593_v21  ;;  %v429_v14 = vpop.permute.xlu1 %428  ;;  %v425_v55 = vpop.permute.xlu0 %424  ;;  %v530_v7 = vadd.f32 %v529_v57, %v528_v24  ;;  %v525_v0 = vadd.f32 %v524_v27, %v523_v6  ;;  %v664_v19 = vadd.f32 %v976_v61, %v482_v28 }
  0xb5   : > { %v470_v51 = vmul.f32 %v429_v14, %v951_v31  ;;  %v469_v52 = vmul.f32 %v425_v55, %v949_v30  ;;  %v552_v21 = vadd.f32 %v551_v35, %v550_v48  ;;  %v517_v24 = vrot.slane %v516_v5, 1 }
  0xb6   : > { %v596_v34 = vrot.slane %v595_v53, 2  ;;  %v531_v54 = vrot.slane %v530_v7, 4  ;;  %v509_v6 = vadd.f32 %v508_v15, %v507_v22  ;;  %v588_v27 = vadd.f32 %v587_v13, %v586_v8 }
  0xb7   : > { %v601_v12 = vsel %vm473_vm0, %v470_v51, 0.0  ;;  %v600_v59 = vsel %vm473_vm0, %v469_v52, 0.0  ;;  %v526_v55 = vrot.slane %v525_v0, 1  ;;  %v553_v2 = vrot.slane %v552_v21, 1 }
  0xb8   : > { %v602_v20 = vadd.f32 %v601_v12, %v600_v59  ;;  %v352_v3 = vpop.permute.xlu1 %351  ;;  %v348_v57 = vpop.permute.xlu0 %347  ;;  %v532_v14 = vadd.f32 %v531_v54, %v530_v7  ;;  %v597_v51 = vadd.f32 %v596_v34, %v595_v53  ;;  %v580_v28 = vrot.slane %v579_v33, 1 }
  0xb9   : > { %v456_v38 = vmul.f32 %v352_v3, %v951_v31  ;;  %v455_v1 = vmul.f32 %v348_v57, %v949_v30  ;;  %v518_v7 = vadd.f32 %v517_v24, %v516_v5  ;;  %v589_v15 = vrot.slane %v588_v27, 1 }
  0xba   : > { %v603_v62 = vrot.slane %v602_v20, 4  ;;  %v533_v47 = vrot.slane %v532_v14, 2  ;;  %v527_v53 = vadd.f32 %v526_v55, %v525_v0  ;;  %v598_v3 = vrot.slane %v597_v51, 1 }
  0xbb   : > { %v538_v52 = vsel %vm473_vm0, %v456_v38, 0.0  ;;  %v537_v48 = vsel %vm473_vm0, %v455_v1, 0.0  ;;  %v554_v5 = vadd.f32 %v553_v2, %v552_v21  ;;  %v590_v1 = vadd.f32 %v589_v15, %v588_v27 }
  0xbc   : > { %v604_v35 = vadd.f32 %v603_v62, %v602_v20  ;;  %v539_v10 = vadd.f32 %v538_v52, %v537_v48  ;;  %v440_v12 = vpop.permute.xlu1 %439  ;;  %v436_v54 = vpop.permute.xlu0 %435  ;;  %v534_v59 = vadd.f32 %v533_v47, %v532_v14  ;;  %v667_v20 = vadd.f32 %v636_v25, %v509_v6 }
  0xbd   : > { %v472_v22 = vmul.f32 %v440_v12, %v951_v31  ;;  %v471_v8 = vmul.f32 %v436_v54, %v949_v30  ;;  %v581_v31 = vadd.f32 %v580_v28, %v579_v33  ;;  %v668_v30 = vadd.f32 %v637_v40, %v518_v7 }
  0xbe   : > { %v605_v13 = vrot.slane %v604_v35, 2  ;;  %v540_v34 = vrot.slane %v539_v10, 4  ;;  %v535_v57 = vrot.slane %v534_v59, 1  ;;  %v669_v55 = vadd.f32 %v638_v44, %v527_v53 }
  0xbf   : > { %v610_v38 = vsel %vm473_vm0, %v472_v22, 0.0  ;;  %v609_v62 = vsel %vm473_vm0, %v471_v8, 0.0  ;;  %v714_v25 = vadd.f32 %v683_v16, %v1063_v56  ;;  %v599_v21 = vadd.f32 %v598_v3, %v597_v51 }
  0xc0   : > { %v606_v47 = vadd.f32 %v605_v13, %v604_v35  ;;  %v541_v24 = vadd.f32 %v540_v34, %v539_v10  ;;  %v536_v0 = vadd.f32 %v535_v57, %v534_v59  ;;  %v611_v14 = vadd.f32 %v610_v38, %v609_v62 }
  0xc1   : > { %v712_v40 = vadd.f32 %v664_v19, %v978_v63  ;;  %v715_v27 = vadd.f32 %v684_v26, %v667_v20  ;;  %v672_v28 = vadd.f32 %v971_v58, %v554_v5  ;;  %v675_v35 = vadd.f32 %v643_v29, %v581_v31 }
  0xc2   : > { %v607_v52 = vrot.slane %v606_v47, 1  ;;  %v542_v48 = vrot.slane %v541_v24, 2  ;;  %v670_v33 = vadd.f32 %v639_v50, %v536_v0  ;;  %v612_v6 = vrot.slane %v611_v14, 4 }
  0xc3   : > { %v716_v16 = vadd.f32 %v685_v41, %v668_v30  ;;  %v674_v50 = vadd.f32 %v642_v17, %v1069_v36  ;;  %v676_v26 = vadd.f32 %v644_v42, %v590_v1  ;;  %v717_v19 = vadd.f32 %v686_v45, %v669_v55 }
  0xc4   : > { %v608_v2 = vadd.f32 %v607_v52, %v606_v47  ;;  %v543_v44 = vadd.f32 %v542_v48, %v541_v24  ;;  %v613_v56 = vadd.f32 %v612_v6, %v611_v14  ;;  %v747_v10 = vrot.slane %v714_v25, 6 }
  0xc5   : > { %v677_v29 = vadd.f32 %v645_v46, %v599_v21  ;;  %v718_v41 = vadd.f32 %v687_v4, %v670_v33  ;;  %v746_v54 = vsel %vm745_vm1, %v744_v39, %v712_v40  ;;  %v750_v17 = vrot.slane %v715_v27, 5 }
  0xc6   : > { %v544_v51 = vrot.slane %v543_v44, 1  ;;  %v614_v12 = vrot.slane %v613_v56, 2  ;;  %v678_v42 = vadd.f32 %v646_v9, %v608_v2  ;;  %v720_v45 = vadd.f32 %v672_v28, %v973_v60 }
  0xc7   : > { %v723_v7 = vadd.f32 %v691_v32, %v675_v35  ;;  %v753_v59 = vrot.slane %v716_v16, 4  ;;  %v722_v4 = vadd.f32 %v690_v18, %v674_v50  ;;  %v724_v23 = vadd.f32 %v692_v43, %v676_v26 }
  0xc8   : > { %v545_v36 = vadd.f32 %v544_v51, %v543_v44  ;;  %v615_v46 = vadd.f32 %v614_v12, %v613_v56  ;;  %v756_v22 = vrot.slane %v717_v19, 3  ;;  %v749_v9 = vsel %vm748_vm2, %v747_v10, %v746_v54 }
  0xc9   : > { %v725_v8 = vadd.f32 %v693_v49, %v677_v29  ;;  %v759_v15 = vrot.slane %v718_v41, 2  ;;  %v752_v53 = vsel %vm751_vm3, %v750_v17, %v749_v9  ;;  %v1165_v13 = vrot.slane %v973_v60, 6 }
  0xca   : > { %v671_v39 = vadd.f32 %v640_v37, %v545_v36  ;;  %v616_v32 = vrot.slane %v615_v46, 1  ;;  %v1166_v34 = vrot.slane %v978_v63, 7  ;;  %v695_v3 = vrot.slane %v973_v60, 7 }
  0xcb   : > { %v726_v18 = vadd.f32 %v1165_v13, %v678_v42  ;;  %v1167_v61 = vrot.slane %v1045_v11, 7  ;;  %v769_v57 = vrot.slane %v723_v7, 5  ;;  %v755_v38 = vsel %vm754_vm4, %v753_v59, %v752_v53 }
  0xcc   : > { %v719_v43 = vadd.f32 %v1166_v34, %v671_v39  ;;  %v617_v49 = vadd.f32 %v616_v32, %v615_v46  ;;  %v767_v62 = vrot.slane %v722_v4, 6  ;;  %v771_v20 = vrot.slane %v724_v23, 4 }
  0xcd   : > { %v766_v37 = vsel %vm745_vm1, %v1167_v61, %v720_v45  ;;  %v758_v5 = vsel %vm757_vm5, %v756_v22, %v755_v38  ;;  %v773_v47 = vrot.slane %v725_v8, 3  ;;  %v1168_v11 = vrot.slane %v971_v58, 7 }
  0xce   : > { %v762_v63 = vrot.slane %v719_v43, 1  ;;  %v761_v60 = vsel %vm760_vm6, %v759_v15, %v758_v5  ;;  %v768_v31 = vsel %vm748_vm2, %v767_v62, %v766_v37  ;;  %v775_v30 = vrot.slane %v726_v18, 2 }
  0xcf   : > { %v679_v24 = vadd.f32 %v1168_v11, %v617_v49  ;;  %v770_v14 = vsel %vm751_vm3, %v769_v57, %v768_v31 }
  0xd0   : > { %v764_v0 = vsel %vm763_vm7, %v762_v63, %v761_v60  ;;  %v772_v55 = vsel %vm754_vm4, %v771_v20, %v770_v14 }
  0xd1   : > { %781 = vst.msk [vmem:[%s259_s13] sm:$0xff] %vm473_vm0, %v764_v0  ;;  %v727_v1 = vadd.f32 %v695_v3, %v679_v24  ;;  %v774_v52 = vsel %vm757_vm5, %v773_v47, %v772_v55 }
  0xd2   : > { %v776_v25 = vsel %vm760_vm6, %v775_v30, %v774_v52 }
  0xd3   : > { %v777_v48 = vrot.slane %v727_v1, 1 }
  0xd5   : > { %v778_v58 = vsel %vm763_vm7, %v777_v48, %v776_v25 }
  0xd6   : > { %782 = vst.msk [vmem:[%s259_s13 + $0x8] sm:$0xff] %vm473_vm0, %v778_v58 }
  0xd7 PF: > { %s16_s20 = sadd.s32 1, %s890_s20  }
  0xd8   : > { %p13_p4 = scmp.ge.s32.totalorder %s16_s20, 4  }
  0xda   :  { %15 = sbr.rel (!%p13_p4) target bundleno = 2 (0x2), region = 76 }

</bundles_post_ra>
